<compile_context>
chip_gen: v6e
topology: v6e:2x2x1
jax: 0.10.0
libtpu: 0.0.40
codegen_flags: <defaults>
</compile_context>

<pallas_src>
import functools

import numpy as np
import jax
import jax.numpy as jnp
from jax.experimental import pallas as pl
from jax.experimental.pallas import tpu as pltpu


# ---------------------------------------------------------------------------
# Deterministic "parameter" construction (equivalent of the registered `grid`
# buffer in the PyTorch module), factored into separable 1-D maps.
# ---------------------------------------------------------------------------
def _interp_matrix(out_size: int, in_size: int, coords_norm: np.ndarray) -> np.ndarray:
    """Row-interpolation matrix replicating torch.nn.functional.grid_sample
    (bilinear, zero padding, align_corners=False) along one axis."""
    pos = ((coords_norm + 1.0) * in_size - 1.0) / 2.0   # align_corners=False
    f = np.floor(pos).astype(np.int64)
    w_hi = pos - f                                      # weight for index f+1
    w_lo = 1.0 - w_hi                                   # weight for index f
    A = np.zeros((out_size, in_size), dtype=np.float64)
    rows = np.arange(out_size)
    for idx, w in ((f, w_lo), (f + 1, w_hi)):
        valid = (idx >= 0) & (idx < in_size)            # zero padding outside
        A[rows[valid], idx[valid]] += w[valid]
    return A.astype(np.float32)


def build_warp_matrices(H: int, W: int, warp: bool = True):
    """Reproduce LogFrequencyScale.get_grid as two 1-D interpolation matrices."""
    yv = np.linspace(-1.0, 1.0, H)
    xv = np.linspace(-1.0, 1.0, W)
    if warp:   # linear -> log frequency
        gy = (np.power(21.0, (yv + 1.0) / 2.0) - 11.0) / 10.0
    else:      # log -> linear frequency
        gy = np.log(yv * 10.0 + 11.0) / np.log(21.0) * 2.0 - 1.0
    gx = xv    # identity along time (still resampled by align_corners=False)
    Ay = _interp_matrix(H, H, gy)   # (H_out, H_in)
    Ax = _interp_matrix(W, W, gx)   # (W_out, W_in), tridiagonal
    return Ay, Ax


def _tridiagonal_taps(Ax: np.ndarray):
    """Extract the 3 diagonals of the (tridiagonal) time-axis matrix as stencil
    taps: out[w] = cm1[w]*x[w-1] + c0[w]*x[w] + cp1[w]*x[w+1]."""
    W = Ax.shape[0]
    c0 = np.ascontiguousarray(np.diagonal(Ax)).astype(np.float32)
    cm1 = np.concatenate([[0.0], np.diagonal(Ax, -1)]).astype(np.float32)
    cp1 = np.concatenate([np.diagonal(Ax, 1), [0.0]]).astype(np.float32)
    # Build-time proof the stencil is exactly equivalent to the dense matrix
    band = np.zeros_like(Ax)
    idx = np.arange(W)
    band[idx, idx] = c0
    if W > 1:
        band[idx[1:], idx[:-1]] = cm1[1:]
        band[idx[:-1], idx[1:]] = cp1[:-1]
    assert np.allclose(band, Ax), "time-axis grid_sample matrix is not tridiagonal"
    return cm1, c0, cp1


# ---------------------------------------------------------------------------
# Pallas kernel: per grid step, TB images of shape (H, W*C).
#   time axis : 3-tap lane stencil (pltpu.roll + VPU FMA), exact f32
#   freq axis : A_y matmul on the MXU, bf16 operands, f32 accumulation
# ---------------------------------------------------------------------------
def _warp_kernel(ay_ref, cm1_ref, c0_ref, cp1_ref, x_ref, o_ref, *, tb, cshift):
    _, h, q = x_ref.shape
    # hoist the (1, Q) -> (H, Q) coefficient broadcasts out of the image loop
    cm1 = jnp.broadcast_to(cm1_ref[...], (h, q))
    c0 = jnp.broadcast_to(c0_ref[...], (h, q))
    cp1 = jnp.broadcast_to(cp1_ref[...], (h, q))
    ay = ay_ref[...]                                        # (H, H) bf16
    for t in range(tb):                                     # static, small unroll
        img = x_ref[t].astype(jnp.float32)                  # (H, Q)
        # shift by +-1 in W == shift by +-C in the flat (W*C) lane axis; the
        # wrapped-around columns are multiplied by zero coefficients.
        xm = pltpu.roll(img, shift=cshift, axis=1)          # img[:, q - C]
        xp = pltpu.roll(img, shift=q - cshift, axis=1)      # img[:, q + C]
        tw = img * c0 + xm * cm1 + xp * cp1                 # time-axis resample
        out = jnp.dot(ay, tw.astype(jnp.bfloat16),
                      preferred_element_type=jnp.float32)   # freq-axis warp (MXU)
        o_ref[t] = out.astype(o_ref.dtype)


def _choose_tb(B, per_image_bytes, budget=24 * 1024 * 1024, max_tb=16):
    """Largest batch-tile that (a) divides B, (b) keeps double-buffered in+out
    tiles under a v5e/v6e/v7x-safe VMEM budget, (c) leaves >=2 grid steps so
    v7x can shard across both TensorCores."""
    best = 1
    for tb in range(1, min(B, max_tb) + 1):
        if B % tb:
            continue
        if 4 * tb * per_image_bytes > budget:   # 2 (dbl-buffer) x (in + out)
            continue
        if B >= 2 and B // tb < 2:
            continue
        best = tb
    return best


def log_frequency_scale(sp: jax.Array, warp: bool = True) -> jax.Array:
    """Forward pass of LogFrequencyScale for ordering='BHWC'.

    sp: (B, H, W, C) spectrogram (complex inputs are represented as C carrying
        the [real, imag] pair, matching torch.view_as_real).
    """
    B, H, W, C = sp.shape
    Q = W * C
    Ay_np, Ax_np = build_warp_matrices(H, W, warp)
    cm1, c0, cp1 = _tridiagonal_taps(Ax_np)

    ay = jnp.asarray(Ay_np, dtype=jnp.bfloat16)            # (H, H), MXU operand
    cm1_q = jnp.asarray(np.repeat(cm1, C)[None, :])        # (1, Q) f32 taps
    c0_q = jnp.asarray(np.repeat(c0, C)[None, :])
    cp1_q = jnp.asarray(np.repeat(cp1, C)[None, :])

    # BHWC stays in place: merging the last two dims is a free reshape
    x = sp.reshape(B, H, Q)

    per_image_bytes = H * Q * np.dtype(sp.dtype).itemsize
    tb = _choose_tb(B, per_image_bytes)
    kernel = functools.partial(_warp_kernel, tb=tb, cshift=C)

    out = pl.pallas_call(
        kernel,
        out_shape=jax.ShapeDtypeStruct((B, H, Q), sp.dtype),
        grid_spec=pltpu.PrefetchScalarGridSpec(
            num_scalar_prefetch=0,
            grid=(B // tb,),
            in_specs=[
                pl.BlockSpec((H, H), lambda i: (0, 0)),       # A_y (shared, bf16)
                pl.BlockSpec((1, Q), lambda i: (0, 0)),       # stencil tap w-1
                pl.BlockSpec((1, Q), lambda i: (0, 0)),       # stencil tap w
                pl.BlockSpec((1, Q), lambda i: (0, 0)),       # stencil tap w+1
                pl.BlockSpec((tb, H, Q), lambda i: (i, 0, 0)),  # TB images
            ],
            out_specs=pl.BlockSpec((tb, H, Q), lambda i: (i, 0, 0)),
        ),
        compiler_params=pltpu.CompilerParams(
            dimension_semantics=("parallel",),
            vmem_limit_bytes=32 * 1024 * 1024,
        ),
    )(ay, cm1_q, c0_q, cp1_q, x)

    # (B, H, W*C) -> (B, H, W, C): free reshape, no transpose
    return out.reshape(B, H, W, C)


if __name__ == "__main__":
    key = jax.random.PRNGKey(0)
    # (batch, freq bins, time frames, channels=[real, imag]); W*C = 128 keeps
    # the output store lane-dense.
    B, H, W, C = 2, 32, 64, 2
    sp = jax.random.normal(key, (B, H, W, C), dtype=jnp.float32)

    out = log_frequency_scale(sp, warp=True)
    jax.block_until_ready(out)

    # pure-JAX f32 reference of the same separable bilinear grid_sample
    Ay_np, Ax_np = build_warp_matrices(H, W, warp=True)
    ref = jnp.einsum(
        "oh,bhwc,pw->bopc",
        jnp.asarray(Ay_np), sp, jnp.asarray(Ax_np),
        precision=jax.lax.Precision.HIGHEST,
    )
    assert out.shape == sp.shape and out.dtype == sp.dtype
    err = float(jnp.max(jnp.abs(out - ref)))
    # bf16 MXU operands (f32 accumulation) -> loosened tolerance vs f32 reference
    assert jnp.allclose(out, ref, atol=3e-2, rtol=3e-2), err
    print("KERNEL_OK")
</pallas_src>

<mosaic_0001>
module attributes {stable_mosaic.version = 11 : i64} {
  func.func @_warp_kernel(%arg0: i32, %arg1: memref<32x32xbf16, #tpu.memory_space<vmem>>, %arg2: memref<1x128xf32, #tpu.memory_space<vmem>>, %arg3: memref<1x128xf32, #tpu.memory_space<vmem>>, %arg4: memref<1x128xf32, #tpu.memory_space<vmem>>, %arg5: memref<1x32x128xf32, #tpu.memory_space<vmem>>, %arg6: memref<1x32x128xf32, #tpu.memory_space<vmem>>) attributes {dimension_semantics = [#tpu.dimension_semantics<parallel>], iteration_bounds = array<i64: 2>, scalar_prefetch = 0 : i64, scratch_operands = 0 : i64, tpu.core_type = #tpu.core_type<tc>, window_params = [{pipeline_mode = #tpu.pipeline_mode<synchronous>, transform_indices = @transform_0, window_bounds = array<i64: 32, 32>}, {pipeline_mode = #tpu.pipeline_mode<synchronous>, transform_indices = @transform_1, window_bounds = array<i64: 1, 128>}, {pipeline_mode = #tpu.pipeline_mode<synchronous>, transform_indices = @transform_2, window_bounds = array<i64: 1, 128>}, {pipeline_mode = #tpu.pipeline_mode<synchronous>, transform_indices = @transform_3, window_bounds = array<i64: 1, 128>}, {transform_indices = @transform_4, window_bounds = array<i64: 1, 32, 128>}, {transform_indices = @transform_5, window_bounds = array<i64: 1, 32, 128>}]} {
    %c0 = arith.constant 0 : index
    %c0_0 = arith.constant 0 : index
    %0 = vector.load %arg2[%c0, %c0_0] : memref<1x128xf32, #tpu.memory_space<vmem>>, vector<1x128xf32>
    %1 = vector.shape_cast %0 : vector<1x128xf32> to vector<1x128xf32>
    %2 = vector.broadcast %1 : vector<1x128xf32> to vector<32x128xf32>
    %c0_1 = arith.constant 0 : index
    %c0_2 = arith.constant 0 : index
    %3 = vector.load %arg3[%c0_1, %c0_2] : memref<1x128xf32, #tpu.memory_space<vmem>>, vector<1x128xf32>
    %4 = vector.shape_cast %3 : vector<1x128xf32> to vector<1x128xf32>
    %5 = vector.broadcast %4 : vector<1x128xf32> to vector<32x128xf32>
    %c0_3 = arith.constant 0 : index
    %c0_4 = arith.constant 0 : index
    %6 = vector.load %arg4[%c0_3, %c0_4] : memref<1x128xf32, #tpu.memory_space<vmem>>, vector<1x128xf32>
    %7 = vector.shape_cast %6 : vector<1x128xf32> to vector<1x128xf32>
    %8 = vector.broadcast %7 : vector<1x128xf32> to vector<32x128xf32>
    %c0_5 = arith.constant 0 : index
    %c0_6 = arith.constant 0 : index
    %9 = vector.load %arg1[%c0_5, %c0_6] : memref<32x32xbf16, #tpu.memory_space<vmem>>, vector<32x32xbf16>
    %c0_7 = arith.constant 0 : index
    %c0_8 = arith.constant 0 : index
    %c0_9 = arith.constant 0 : index
    %10 = vector.load %arg5[%c0_7, %c0_8, %c0_9] : memref<1x32x128xf32, #tpu.memory_space<vmem>>, vector<1x32x128xf32>
    %11 = vector.shape_cast %10 : vector<1x32x128xf32> to vector<32x128xf32>
    %c2_i32 = arith.constant 2 : i32
    %12 = tpu.dynamic_rotate %11 by %c2_i32 dim 1 : vector<32x128xf32>, i32 -> vector<32x128xf32>
    %c126_i32 = arith.constant 126 : i32
    %13 = tpu.dynamic_rotate %11 by %c126_i32 dim 1 : vector<32x128xf32>, i32 -> vector<32x128xf32>
    %14 = arith.mulf %11, %5 : vector<32x128xf32>
    %15 = arith.mulf %12, %2 : vector<32x128xf32>
    %16 = arith.addf %14, %15 : vector<32x128xf32>
    %17 = arith.mulf %13, %8 : vector<32x128xf32>
    %18 = arith.addf %16, %17 : vector<32x128xf32>
    %19 = arith.truncf %18 : vector<32x128xf32> to vector<32x128xbf16>
    %cst = arith.constant dense<0.000000e+00> : vector<32x128xf32>
    %20 = tpu.matmul %9, %19, %cst {dimension_numbers = #tpu.dot_dimension_numbers<[1], [0], [0], [1], [0, 0, 1, 1], [], []>} : vector<32x32xbf16>, vector<32x128xbf16>, vector<32x128xf32> -> vector<32x128xf32>
    %c0_10 = arith.constant 0 : index
    %c0_11 = arith.constant 0 : index
    %c0_12 = arith.constant 0 : index
    %21 = vector.load %arg6[%c0_10, %c0_11, %c0_12] : memref<1x32x128xf32, #tpu.memory_space<vmem>>, vector<1x32x128xf32>
    %22 = vector.shape_cast %21 : vector<1x32x128xf32> to vector<32x128xf32>
    %23 = vector.shape_cast %20 : vector<32x128xf32> to vector<1x32x128xf32>
    tpu.vector_store %arg6[%c0_10, %c0_11, %c0_12], %23 {strides = array<i32>} : memref<1x32x128xf32, #tpu.memory_space<vmem>>, vector<1x32x128xf32>,
    return
  }
  func.func @transform_0(%arg0: i32) -> (i32, i32) {
    %c0_i32 = arith.constant 0 : i32
    %c0_i32_0 = arith.constant 0 : i32
    %c0_i32_1 = arith.constant 0 : i32
    return %c0_i32, %c0_i32_0 : i32, i32
  }
  func.func @transform_1(%arg0: i32) -> (i32, i32) {
    %c0_i32 = arith.constant 0 : i32
    %c0_i32_0 = arith.constant 0 : i32
    %c0_i32_1 = arith.constant 0 : i32
    return %c0_i32, %c0_i32_0 : i32, i32
  }
  func.func @transform_2(%arg0: i32) -> (i32, i32) {
    %c0_i32 = arith.constant 0 : i32
    %c0_i32_0 = arith.constant 0 : i32
    %c0_i32_1 = arith.constant 0 : i32
    return %c0_i32, %c0_i32_0 : i32, i32
  }
  func.func @transform_3(%arg0: i32) -> (i32, i32) {
    %c0_i32 = arith.constant 0 : i32
    %c0_i32_0 = arith.constant 0 : i32
    %c0_i32_1 = arith.constant 0 : i32
    return %c0_i32, %c0_i32_0 : i32, i32
  }
  func.func @transform_4(%arg0: i32) -> (i32, i32, i32) {
    %c0_i32 = arith.constant 0 : i32
    %c0_i32_0 = arith.constant 0 : i32
    %c0_i32_1 = arith.constant 0 : i32
    return %arg0, %c0_i32, %c0_i32_0 : i32, i32, i32
  }
  func.func @transform_5(%arg0: i32) -> (i32, i32, i32) {
    %c0_i32 = arith.constant 0 : i32
    %c0_i32_0 = arith.constant 0 : i32
    %c0_i32_1 = arith.constant 0 : i32
    return %arg0, %c0_i32, %c0_i32_0 : i32, i32, i32
  }
}

</mosaic_0001>

<bundles_post_ra>
// kernel: tpu_custom_call.1
= control target key start
LH: loop header
LB: loop body
LE: loop exit
PB: predicated region body
PF: predicated region fallthrough
CT: control target
= control target key end

     0   :  { %10 = vsyncpa [#allocation3], 0  ;;  %s956_s0 = inlined_call_operand.hbm [shape: bf16[32,32], index: 0, kind: input, shape index: {}]   ;;  %s957_s1 = inlined_call_operand.vmem [shape: f32[1,128], index: 1, kind: input, shape index: {}]   ;;  %s958_s2 = inlined_call_operand.vmem [shape: f32[1,128], index: 2, kind: input, shape index: {}]   ;;  %s959_s3 = inlined_call_operand.vmem [shape: f32[1,128], index: 3, kind: input, shape index: {}]   ;;  %s960_s4 = inlined_call_operand.hbm [shape: f32[2,32,128], index: 4, kind: input, shape index: {}]   ;;  %s961_s5 = inlined_call_operand.hbm [shape: f32[2,32,128], index: 5, kind: output, shape index: {}]  }
   0x1   :  { %11 = vsyncpa [#allocation6], 0 }
   0x2   :  { %13 = vsyncpa [#allocation6 + $0x1], 0 }
   0x3   :  { %14 = vsyncpa [#allocation4], 0 }
   0x4   :  { %16 = vsyncpa [#allocation4 + $0x1], 0  ;;  %s764_s18 = smov 0   ;;  %s766_s19 = smov 0  }
   0x5   :  { %s768_s20 = smov 0   ;;  %s770_s21 = smov 0  }
   0x6 LB: > { %s785_s22 = sadd.s32 4294967295, %s721_s21   ;;  %s495_s23 = sadd.s32 4294967294, %s721_s21   ;;  %s721_s21 = sphi %s770_s21, %s983_s21   ;;  %s717_s20 = sphi %s768_s20, %s982_s20   ;;  %s713_s19 = sphi %s766_s19, %s981_s19   ;;  %s709_s18 = sphi %s764_s18, %s980_s18  }
   0x7   : > { %p126_p0 = scmp.ne.s32.totalorder %s713_s19, %s709_s18  ;;  %p962_p1 = scmp.eq.s32.totalorder %s785_s22, 0 }
   0x8   : > { %p156_p3 = scmp.eq.s32.totalorder %s495_s23, 1  ;;  %p496_p5 = scmp.ge.s32.totalorder %s721_s21, 1 }
   0x9   : > { %p794_p4 = por %p962_p1, %p126_p0  ;;  %p163_p7 = scmp.lt.s32.totalorder %s721_s21, 3 }
   0xa   : > { %p799_p6 = por %p156_p3, %p126_p0  ;;  %s723_s27 = smov [#allocation2]  }
   0xb   : > { %s966_s24 = scalar_select %p794_p4, 1, 0 }
   0xc   : > { %s967_s25 = scalar_select %p799_p6, 1, 0 }
   0xd   : > { %p804_p8 = pnand %p496_p5, %p163_p7  ;;  %s175_s28 = sshll.u32 %s723_s27, 4  ;;  %s176_s28 = int_to_ptr.vmem [resolvable:$true] %s175_s28 }
   0xe   : > { %s818_s30 = sadd.s32 1, %s721_s21   ;;  %s113_s6 = sadd.s32 1, %s717_s20 }
   0xf   : > { %s968_s26 = scalar_select %p804_p8, 1, 0 }
  0x10   : > { %p540_p9 = pneg %p804_p8  ;;  %s110_s7 = ssub.s32 %s721_s21, %s818_s30 }
  0x11   : > { %s610_s8 = scalar_lea.vmem %s176_s28, 256  ;;  %p618_p5 = scmp.lt.s32.totalorder %s176_s28, %s176_s28 }
  0x12   : > { %p813_p11 = pnand %p540_p9, %p962_p1  ;;  %p611_p13 = scmp.ne.s32.totalorder %s176_s28, %s610_s8 }
  0x13   : > { %p619_p7 = scmp.lt.s32.totalorder %s610_s8, %s610_s8 }
  0x14   : > { %p601_p12 = pneg %p813_p11 }
  0x15   : > { %p620_p10 = por %p619_p7, %p618_p5 }
  0x16   : > { %p613_p0 = pnand %p611_p13, %p601_p12 }
  0x18   : > { %p614_p3 = pneg %p613_p0 }
  0x1a   : > { %p621_p2 = pnand %p620_p10, %p614_p3 }
  0x1c   : > { %624 = shalt.err (!%p621_p2)
}
  0x1d   : > { %s724_s9 = smov 64   ;;  %s725_s10 = smov 4  }
  0x1e   : > { %543 = dma.hbm_to_vmem [thread:$0]  (!%p813_p11), %s956_s0, 256, %s176_s28, [#allocation3], %s724_s9, %s724_s9, %s725_s10  }
  0x1f   : > { %p111_p9 = scmp.eq.s32.totalorder %s110_s7, 0  ;;  %p120_p12 = scmp.ne.s32.totalorder %s717_s20, %s713_s19 }
  0x20   : > { %p121_p10 = scmp.eq.s32.totalorder %s721_s21, 0  ;;  %p553_p2 = scmp.lt.s32.totalorder %s721_s21, 2 }
  0x21   : > { %s835_s13 = scalar_select %p111_p9, %s717_s20, %s113_s6  }
  0x22   : > { %p122_p13 = por %p121_p10, %p120_p12  ;;  %p970_p0 = scmp.eq.s32.totalorder %s785_s22, 1 }
  0x23   : > { %s198_s15 = sand.u32 1, %s717_s20   ;;  %s518_s16 = sshll.u32 %s721_s21, 9 }
  0x24   : > { %p839_p3 = por %p970_p0, %p120_p12  ;;  %s499_s17 = sshll.u32 %s198_s15, 5 }
  0x25   : > { %s848_s29 = scalar_lea.hbm %s960_s4, %s518_s16  ;;  %s202_s28 = scalar_lea.vmem [#allocation5], %s499_s17 }
  0x26   : > { %s971_s14 = scalar_select %p839_p3, 1, 0 }
  0x27   : > { %s209_s6 = sshll.u32 %s202_s28, 4  ;;  %p850_p11 = pnand %p553_p2, %p122_p13  ;;  %s854_s6 = int_to_ptr.vmem [resolvable:$true] %s209_s6 }
  0x28   : > { %s856_s8 = scalar_lea.sflag [#allocation6], %s198_s15  ;;  %s625_s9 = scalar_lea.hbm %s848_s29, 512 }
  0x29   : > { %p626_p5 = scmp.ne.s32.totalorder %s848_s29, %s625_s9  ;;  %p627_p7 = pneg %p850_p11 }
  0x2a   : > { %s630_s12 = scalar_lea.hbm %s960_s4, 1024  ;;  %p631_p10 = scmp.lt.s32.totalorder %s848_s29, %s960_s4 }
  0x2b   : > { %p628_p9 = pnand %p627_p7, %p626_p5  ;;  %p632_p2 = scmp.lt.s32.totalorder %s630_s12, %s625_s9 }
  0x2d   : > { %p629_p12 = pneg %p628_p9  ;;  %p633_p13 = por %p632_p2, %p631_p10 }
  0x2f   : > { %p634_p0 = pnand %p633_p13, %p629_p12 }
  0x31   : > { %637 = shalt.err (!%p634_p0)
}
  0x32   : > { %s638_s15 = scalar_lea.vmem %s854_s6, 512  ;;  %s726_s23 = smov [#allocation5]  }
  0x33   : > { %p639_p1 = scmp.ne.s32.totalorder %s854_s6, %s638_s15  ;;  %s643_s27 = sshll.u32 %s726_s23, 4  ;;  %s644_s27 = int_to_ptr.vmem [resolvable:$false] %s643_s27 }
  0x34   : > { %s645_s28 = scalar_lea.vmem %s644_s27, 1024  ;;  %p646_p9 = scmp.lt.s32.totalorder %s854_s6, %s644_s27 }
  0x35   : > { %p641_p6 = pnand %p639_p1, %p627_p7  ;;  %p647_p3 = scmp.lt.s32.totalorder %s645_s28, %s638_s15 }
  0x37   : > { %p642_p5 = pneg %p641_p6  ;;  %p648_p4 = por %p647_p3, %p646_p9 }
  0x39   : > { %p649_p8 = pnand %p648_p4, %p642_p5 }
  0x3b   : > { %652 = shalt.err (!%p649_p8)
}
  0x3c   : > { %s727_s9 = smov 128   ;;  %s728_s10 = smov 8  }
  0x3d   : > { %547 = dma.hbm_to_vmem [thread:$0]  (!%p850_p11), %s848_s29, 512, %s854_s6, %s856_s8, %s727_s9, %s727_s9, %s728_s10  }
  0x3e   : > { %p973_p1 = scmp.ne.s32.totalorder %s968_s26, 0 }
  0x3f   : > { %p974_p6 = scmp.eq.s32.totalorder (!%p973_p1), %s785_s22, 0 }
  0x40   : > { %221 = sbr.rel (%p973_p1) target bundleno = 425 (0x1a9), region = 40 }
  0x45   : > { %696 = dma.done.wait (%p974_p6), [#allocation3], 256   ;;  %p975_p7 = pmov %p974_p6 }
  0x46   : > { %s884_s11 = sand.u32 1, %s713_s19   ;;  %p976_p4 = scmp.ne.s32.totalorder %s966_s24, 0 }
  0x47   : > { %698 = vsyncadd (%p975_p7), [#allocation3], 4294967040  ;;  %s504_s12 = sshll.u32 %s884_s11, 5  ;;  %s228_s16 = scalar_lea.sflag [#allocation6], %s884_s11 }
  0x48   : > { %s231_s29 = scalar_lea.vmem [#allocation5], %s504_s12 }
  0x49   : > { %700 = dma.done.wait (%p976_p4), %s228_s16, 512  }
  0x4a   : > { %702 = vsyncadd (%p976_p4), %s228_s16, 4294966784  ;;  %v286_v0 = vld [vmem:[%s231_s29 + $0x10] sm:$0xff]  ;;  %s729_s26 = smov 126   ;;  %s730_s6 = smov 2   ;;  %v287_v1 = vld [vmem:[%s231_s29 + $0x18] sm:$0xff]  ;;  %vm336_vm0 = vcmask 261120  }
  0x4b   : > { %300 = vrot.lane.b32.xlu1 %v286_v0, %s729_s26  ;;  %292 = vrot.lane.b32.xlu0 %v286_v0, %s730_s6  ;;  %v285_v2 = vld [vmem:[%s231_s29 + $0x8] sm:$0xff]  ;;  %v284_v3 = vld [vmem:[%s231_s29] sm:$0xff]  ;;  %v597_v4 = vld [vmem:[#allocation2] sm:$0xff]   ;;  %s257_s27 = scalar_lea.vmem [#allocation7], %s504_s12  ;;  %s519_s9 = sshll.u32 %s785_s22, 9 }
  0x4c   : > { %528 = vmatprep.mubr.msk.bf16.mxu0 %vm336_vm0, %v597_v4  ;;  %v507_v5 = vld [vmem:[%s958_s2] ss:$0 sm:$0xff]  ;;  %v598_v38 = vld [vmem:[#allocation2 + $0x8] sm:$0xff]   ;;  %s410_s28 = sshll.u32 %s257_s27, 4  ;;  %s913_s29 = scalar_lea.hbm %s961_s5, %s519_s9  ;;  %s908_s28 = int_to_ptr.vmem [resolvable:$true] %s410_s28 }
  0x4d   : > { %v506_v6 = vld [vmem:[%s957_s1] ss:$0 sm:$0xff]  ;;  %v306_v9 = vmul.f32 %v507_v5, %v286_v0  ;;  %v307_v11 = vmul.f32 %v507_v5, %v287_v1  ;;  %v305_v20 = vmul.f32 %v507_v5, %v285_v2  ;;  %v304_v21 = vmul.f32 %v507_v5, %v284_v3  ;;  %s397_s12 = scalar_lea.sflag [#allocation4], %s884_s11  ;;  %p977_p3 = scmp.ne.s32.totalorder %s971_s14, 0 }
  0x4e   : > { %v508_v12 = vld [vmem:[%s959_s3] ss:$0 sm:$0xff]  ;;  %s731_s22 = smov [#allocation7]  }
  0x4f   : > { %302 = vrot.lane.b32.xlu1 %v287_v1, %s729_s26  ;;  %294 = vrot.lane.b32.xlu0 %v287_v1, %s730_s6 }
  0x53   : > { %290 = vrot.lane.b32.xlu1 %v285_v2, %s730_s6  ;;  %288 = vrot.lane.b32.xlu0 %v284_v3, %s730_s6  ;;  %s657_s6 = sshll.u32 %s731_s22, 4  ;;  %s658_s6 = int_to_ptr.vmem [resolvable:$false] %s657_s6 }
  0x54   : > { %s659_s24 = scalar_lea.vmem %s658_s6, 1024  ;;  %p660_p10 = scmp.lt.s32.totalorder %s908_s28, %s658_s6 }
  0x57   : > { %298 = vrot.lane.b32.xlu1 %v285_v2, %s729_s26  ;;  %296 = vrot.lane.b32.xlu0 %v284_v3, %s729_s26  ;;  %s653_s26 = scalar_lea.vmem %s908_s28, 512 }
  0x58   : > { %p654_p8 = scmp.ne.s32.totalorder %s908_s28, %s653_s26  ;;  %p661_p2 = scmp.lt.s32.totalorder %s659_s24, %s653_s26 }
  0x5a   : > { %p655_p11 = pnand %p654_p8, %p977_p3  ;;  %p662_p13 = por %p661_p2, %p660_p10 }
  0x5c   : > { %p656_p12 = pneg %p655_p11 }
  0x5e   : > { %p663_p0 = pnand %p662_p13, %p656_p12 }
  0xbd   : > { %v301_v7 = vpop.permute.xlu1 %300  ;;  %v293_v8 = vpop.permute.xlu0 %292 }
  0xbe   : > { %v310_v10 = vmul.f32 %v506_v6, %v293_v8  ;;  %v318_v17 = vmul.f32 %v508_v12, %v301_v7 }
  0xc0   : > { %v314_v15 = vadd.f32 %v310_v10, %v306_v9 }
  0xc1   : > { %v303_v13 = vpop.permute.xlu1 %302  ;;  %v295_v14 = vpop.permute.xlu0 %294 }
  0xc2   : > { %v311_v16 = vmul.f32 %v506_v6, %v295_v14  ;;  %v319_v18 = vmul.f32 %v508_v12, %v303_v13  ;;  %v322_v26 = vadd.f32 %v318_v17, %v314_v15 }
  0xc4   : > { %v315_v19 = vadd.f32 %v311_v16, %v307_v11 }
  0xc5   : > { %v291_v22 = vpop.permute.xlu1 %290  ;;  %v289_v23 = vpop.permute.xlu0 %288 }
  0xc6   : > { %v309_v24 = vmul.f32 %v506_v6, %v291_v22  ;;  %v308_v25 = vmul.f32 %v506_v6, %v289_v23  ;;  %v323_v27 = vadd.f32 %v319_v18, %v315_v19 }
  0xc8   : > { %v325_v28 = vpack.c.bf16 %v323_v27, %v322_v26  ;;  %v313_v31 = vadd.f32 %v309_v24, %v305_v20  ;;  %v312_v32 = vadd.f32 %v308_v25, %v304_v21 }
  0xc9   : > { %v299_v29 = vpop.permute.xlu1 %298  ;;  %v297_v30 = vpop.permute.xlu0 %296 }
  0xca   : > { %v317_v33 = vmul.f32 %v508_v12, %v299_v29  ;;  %v316_v34 = vmul.f32 %v508_v12, %v297_v30  ;;  %524 = vmatprep.subr.bf16.mxu0 %v325_v28 }
  0xcb   : > { %525 = vmatpush3.bf16.msra.mxu0 %v325_v28 }
  0xcc   : > { %v321_v35 = vadd.f32 %v317_v33, %v313_v31  ;;  %v320_v36 = vadd.f32 %v316_v34, %v312_v32 }
  0xce   : > { %v324_v37 = vpack.c.bf16 %v321_v35, %v320_v36 }
  0xd0   : > { %526 = vmatprep.subr.bf16.mxu0 %v324_v37 }
  0xd1   : > { %527 = vmatpush3.bf16.msra.mxu0 %v324_v37 }
  0xd4   : > { %529 = vmatmul.mubr.msk.bf16.vlgmr.msra.gmra.mxu0 %vm336_vm0, %v598_v38 }
 0x194   : > { %v530_v39 = vpop.f32.mrf.mxu0 }
 0x195   : > { %394 = vst [vmem:[%s257_s27 + $0x10] sm:$0xff] %v530_v39 }
 0x196   : > { %v377_v40 = vpop.f32.mrf.mxu0 }
 0x197   : > { %392 = vst [vmem:[%s257_s27] sm:$0xff] %v377_v40 }
 0x198   : > { %v531_v41 = vpop.f32.mrf.mxu0 }
 0x199   : > { %395 = vst [vmem:[%s257_s27 + $0x18] sm:$0xff] %v531_v41 }
 0x19a   : > { %v380_v42 = vpop.f32.mrf.mxu0 }
 0x19b   : > { %393 = vst [vmem:[%s257_s27 + $0x8] sm:$0xff] %v380_v42 }
 0x19c   : > { %666 = shalt.err (!%p663_p0)
}
 0x19d   : > { %s667_s7 = scalar_lea.hbm %s913_s29, 512  ;;  %s671_s15 = scalar_lea.hbm %s961_s5, 1024 }
 0x19e   : > { %p668_p5 = scmp.ne.s32.totalorder %s913_s29, %s667_s7  ;;  %p672_p6 = scmp.lt.s32.totalorder %s913_s29, %s961_s5 }
 0x19f   : > { %p673_p7 = scmp.lt.s32.totalorder %s671_s15, %s667_s7 }
 0x1a0   : > { %p669_p9 = pnand %p668_p5, %p977_p3 }
 0x1a1   : > { %p674_p4 = por %p673_p7, %p672_p6 }
 0x1a2   : > { %p670_p1 = pneg %p669_p9 }
 0x1a4   : > { %p675_p8 = pnand %p674_p4, %p670_p1 }
 0x1a6   : > { %678 = shalt.err (!%p675_p8)
}
 0x1a7   : > { %s732_s9 = smov 128   ;;  %s733_s10 = smov 8  }
 0x1a8   : > { %538 = dma.vmem_to_hbm [thread:$0]  (%p977_p3), %s908_s28, 512, %s913_s29, %s397_s12, %s732_s9, %s732_s9, %s733_s10  }
 0x1a9 PF: > { %s425_s16 = sand.u32 1, %s709_s18   ;;  %p978_p11 = scmp.ne.s32.totalorder %s967_s25, 0 }
 0x1aa   : > { %p979_p12 = scmp.ge.s32.totalorder %s721_s21, 2  ;;  %s426_s26 = scalar_lea.sflag [#allocation4], %s425_s16 }
 0x1ac   : > { %p549_p10 = pnand %p979_p12, %p978_p11 }
 0x1ae   : > { %p550_p2 = pneg %p549_p10 }
 0x1b0   : > { %704 = dma.done.wait (%p550_p2), %s426_s26, 512  }
 0x1b1   : > { %706 = vsyncadd (%p550_p2), %s426_s26, 4294966784  ;;  %p19_p13 = scmp.ge.s32.totalorder %s818_s30, 4   ;;  %s980_s18 = smov %s713_s19 }
 0x1b2   : > { %s981_s19 = smov %s717_s20  ;;  %s982_s20 = smov %s835_s13 }
 0x1b3   : > { %s983_s21 = smov %s818_s30  ;;  %21 = sbr.rel (!%p19_p13) target bundleno = 6 (0x6), region = 90 }
 0x1b8   :  { %431 = vsyncpa [#allocation3], 1 }
 0x1b9   :  { %433 = vsyncpa [#allocation3 + $0x1], 1 }
 0x1ba   :  { %434 = vsyncpa [#allocation6], 1 }
 0x1bb   :  { %436 = vsyncpa [#allocation6 + $0x1], 1 }
 0x1bc   :  { %437 = vsyncpa [#allocation4], 1 }
 0x1bd   :  { %439 = vsyncpa [#allocation4 + $0x1], 1 }

</bundles_post_ra>
